<compile_context>
chip_gen: v6e
topology: v6e:2x2x1
jax: 0.10.0
libtpu: 0.0.40
codegen_flags: <defaults>
</compile_context>

<pallas_src>
import jax
import jax.numpy as jnp
from jax import lax
from jax.experimental import pallas as pl
from jax.experimental.pallas import tpu as pltpu


def variance_predictor_kernel(
    x_ref,       # (B, T, Cin) f32   input (channels-last)
    w1_ref,      # (K*Cin, H)  bf16  conv1 weight, packed [tap0 | tap1 | tap2] rows
    b1_ref,      # (1, H) f32
    g1_ref,      # (1, H) f32   ln1 gamma
    be1_ref,     # (1, H) f32   ln1 beta
    w2_ref,      # (K*H, H)    bf16  conv2 weight, packed
    b2_ref,      # (1, H) f32
    g2_ref,      # (1, H) f32   ln2 gamma
    be2_ref,     # (1, H) f32   ln2 beta
    wp_ref,      # (H, 1) f32   proj weight (column)
    bp_ref,      # (1, 1) f32   proj bias
    out_ref,     # (1, B*T) f32  lane-dense output row
):
    B, T, Cin = x_ref.shape
    H = b1_ref.shape[1]
    eps = 1e-5

    def taps3(h):
        # h: (T, C) -> (T, 3C) with row t = [h[t-1], h[t], h[t+1]] (zeros at the edges).
        # This is exactly Conv1d(kernel_size=3, padding=1) im2col, built in registers.
        Tl, C = h.shape
        z = jnp.zeros((1, C), jnp.float32)
        prev = jnp.concatenate([z, h[:Tl - 1, :]], axis=0)
        nxt = jnp.concatenate([h[1:, :], z], axis=0)
        return jnp.concatenate([prev, h, nxt], axis=-1)

    def layer_norm(a, g, beta):
        # One-pass statistics: var = E[x^2] - mu^2 (clamped), f32 on the VPU.
        mu = jnp.mean(a, axis=-1, keepdims=True)
        var = jnp.maximum(jnp.mean(a * a, axis=-1, keepdims=True) - mu * mu, 0.0)
        return (a - mu) * lax.rsqrt(var + eps) * g + beta

    # --- conv1 (padding=1) + ReLU: one fused im2col matmul over all batch rows ---
    cols1 = jnp.concatenate([taps3(x_ref[b]) for b in range(B)], axis=0)   # (B*T, 3*Cin)
    a1 = jnp.dot(cols1.astype(jnp.bfloat16), w1_ref[...],
                 preferred_element_type=jnp.float32)                       # (B*T, H) f32
    a1 = jnp.maximum(a1 + b1_ref[...], 0.0)
    h1 = layer_norm(a1, g1_ref[...], be1_ref[...])
    # dropout_module is the identity at inference time (module.eval()).

    # --- conv2 (padding=1) + ReLU: same im2col trick, zero rows built in registers ---
    cols2 = jnp.concatenate(
        [taps3(h1[b * T:(b + 1) * T, :]) for b in range(B)], axis=0)       # (B*T, 3*H)
    a2 = jnp.dot(cols2.astype(jnp.bfloat16), w2_ref[...],
                 preferred_element_type=jnp.float32)
    a2 = jnp.maximum(a2 + b2_ref[...], 0.0)
    h2 = layer_norm(a2, g2_ref[...], be2_ref[...])

    # --- proj Linear(H, 1): VPU multiply + sublane reduction on h2^T ---
    # Produces the lane-dense (1, B*T) row directly (no (.,1) masked store, no N=1 matmul).
    prod = h2.T * wp_ref[...]                                  # (H, B*T) * (H, 1)
    y = jnp.sum(prod, axis=0, keepdims=True) + bp_ref[...]     # (1, B*T)
    out_ref[...] = y


def variance_predictor(x, params):
    """x: (B, T, Cin) f32 -> (B, T) f32, matching VariancePredictor.forward at eval."""
    B, T, Cin = x.shape
    H = params["b1"].shape[1]
    K = params["w1"].shape[0] // Cin
    # conv2 uses a hard-coded padding=1, so only kernel_size=3 keeps the sequence length.
    assert K == 3, "only var_pred_kernel_size=3 is supported"

    def full(shape):
        return pl.BlockSpec(shape, lambda i: (0,) * len(shape))

    out = pl.pallas_call(
        variance_predictor_kernel,
        out_shape=jax.ShapeDtypeStruct((1, B * T), jnp.float32),
        grid_spec=pltpu.PrefetchScalarGridSpec(
            num_scalar_prefetch=0,
            grid=(1,),                      # whole batch fused into a single step
            in_specs=[
                full((B, T, Cin)),
                full((K * Cin, H)),
                full((1, H)), full((1, H)), full((1, H)),
                full((K * H, H)),
                full((1, H)), full((1, H)), full((1, H)),
                full((H, 1)),
                full((1, 1)),
            ],
            out_specs=pl.BlockSpec((1, B * T), lambda i: (0, 0)),
        ),
        compiler_params=pltpu.CompilerParams(dimension_semantics=("parallel",)),
    )(
        x,
        params["w1"], params["b1"], params["g1"], params["be1"],
        params["w2"], params["b2"], params["g2"], params["be2"],
        params["wp"], params["bp"],
    )
    return out.reshape(B, T)                                   # .squeeze(dim=2) equivalent


def pack_params(w1_t, b1, g1, be1, w2_t, b2, g2, be2, wp_t, bp):
    """Repack native PyTorch-layout parameters into the kernel layout."""
    H, Cin, K = w1_t.shape
    return dict(
        # Conv1d weight (out, in, K) -> (K*in, out), rows ordered [tap0 chans | tap1 | tap2].
        w1=jnp.transpose(w1_t, (2, 1, 0)).reshape(K * Cin, H).astype(jnp.bfloat16),
        b1=b1.reshape(1, H),
        g1=g1.reshape(1, H), be1=be1.reshape(1, H),
        w2=jnp.transpose(w2_t, (2, 1, 0)).reshape(K * H, H).astype(jnp.bfloat16),
        b2=b2.reshape(1, H),
        g2=g2.reshape(1, H), be2=be2.reshape(1, H),
        wp=jnp.transpose(wp_t, (1, 0)),      # Linear (1, H) -> (H, 1) column
        bp=bp.reshape(1, 1),
    )


def reference_forward(x, w1_t, b1, g1, be1, w2_t, b2, g2, be2, wp_t, bp, eps=1e-5):
    """Plain-JAX reference using the native PyTorch parameter layouts.

    Conv matmul operands are cast to bf16 (f32 accumulation) to mirror the kernel's
    MXU precision; everything else is f32.
    """
    K = w1_t.shape[2]

    def conv1d_relu(h, w, b, padding):
        hp = jnp.pad(h, ((0, 0), (padding, padding), (0, 0)))
        Tl = h.shape[1]
        acc = jnp.zeros((h.shape[0], Tl, w.shape[0]), jnp.float32)
        for k in range(K):
            acc = acc + jnp.einsum(
                "btc,oc->bto",
                hp[:, k:k + Tl, :].astype(jnp.bfloat16),
                w[:, :, k].astype(jnp.bfloat16),
                preferred_element_type=jnp.float32)
        return jnp.maximum(acc + b, 0.0)

    def ln(h, g, beta):
        mu = jnp.mean(h, axis=-1, keepdims=True)
        var = jnp.mean(jnp.square(h - mu), axis=-1, keepdims=True)
        return (h - mu) * lax.rsqrt(var + eps) * g + beta

    h = ln(conv1d_relu(x, w1_t, b1, (K - 1) // 2), g1, be1)
    h = ln(conv1d_relu(h, w2_t, b2, 1), g2, be2)
    y = jnp.einsum("bth,oh->bto", h, wp_t, precision=lax.Precision.HIGHEST) + bp
    return y[..., 0]


if __name__ == "__main__":
    B, T = 2, 16
    Cin, H, K = 32, 32, 3    # encoder_embed_dim, var_pred_hidden_dim, var_pred_kernel_size
    # var_pred_dropout is irrelevant at inference (Dropout is the identity in eval mode).

    key = jax.random.PRNGKey(0)
    ks = jax.random.split(key, 11)
    x = jax.random.normal(ks[0], (B, T, Cin), jnp.float32)

    # Deterministic synthetic parameters in the native PyTorch layouts.
    w1_t = 0.1 * jax.random.normal(ks[1], (H, Cin, K), jnp.float32)   # Conv1d (out, in, K)
    b1 = 0.1 * jax.random.normal(ks[2], (H,), jnp.float32)
    w2_t = 0.1 * jax.random.normal(ks[3], (H, H, K), jnp.float32)
    b2 = 0.1 * jax.random.normal(ks[4], (H,), jnp.float32)
    g1 = 1.0 + 0.1 * jax.random.normal(ks[5], (H,), jnp.float32)
    be1 = 0.1 * jax.random.normal(ks[6], (H,), jnp.float32)
    g2 = 1.0 + 0.1 * jax.random.normal(ks[7], (H,), jnp.float32)
    be2 = 0.1 * jax.random.normal(ks[8], (H,), jnp.float32)
    wp_t = 0.1 * jax.random.normal(ks[9], (1, H), jnp.float32)        # Linear (out, in)
    bp = 0.1 * jax.random.normal(ks[10], (1,), jnp.float32)

    params = pack_params(w1_t, b1, g1, be1, w2_t, b2, g2, be2, wp_t, bp)

    out = jax.block_until_ready(variance_predictor(x, params))
    ref = reference_forward(x, w1_t, b1, g1, be1, w2_t, b2, g2, be2, wp_t, bp)

    assert out.shape == (B, T), out.shape
    max_err = float(jnp.max(jnp.abs(out - ref)))
    assert jnp.allclose(out, ref, atol=2e-3, rtol=2e-3), max_err
    print("KERNEL_OK")
</pallas_src>

<mosaic_0001>
module attributes {stable_mosaic.version = 11 : i64} {
  func.func @variance_predictor_kernel(%arg0: i32, %arg1: memref<2x16x32xf32, #tpu.memory_space<vmem>>, %arg2: memref<96x32xbf16, #tpu.memory_space<vmem>>, %arg3: memref<1x32xf32, #tpu.memory_space<vmem>>, %arg4: memref<1x32xf32, #tpu.memory_space<vmem>>, %arg5: memref<1x32xf32, #tpu.memory_space<vmem>>, %arg6: memref<96x32xbf16, #tpu.memory_space<vmem>>, %arg7: memref<1x32xf32, #tpu.memory_space<vmem>>, %arg8: memref<1x32xf32, #tpu.memory_space<vmem>>, %arg9: memref<1x32xf32, #tpu.memory_space<vmem>>, %arg10: memref<32x1xf32, #tpu.memory_space<vmem>>, %arg11: memref<1x1xf32, #tpu.memory_space<vmem>>, %arg12: memref<1x32xf32, #tpu.memory_space<vmem>>) attributes {dimension_semantics = [#tpu.dimension_semantics<parallel>], iteration_bounds = array<i64: 1>, scalar_prefetch = 0 : i64, scratch_operands = 0 : i64, tpu.core_type = #tpu.core_type<tc>, window_params = [{pipeline_mode = #tpu.pipeline_mode<synchronous>, transform_indices = @transform_0, window_bounds = array<i64: 2, 16, 32>}, {pipeline_mode = #tpu.pipeline_mode<synchronous>, transform_indices = @transform_1, window_bounds = array<i64: 96, 32>}, {pipeline_mode = #tpu.pipeline_mode<synchronous>, transform_indices = @transform_2, window_bounds = array<i64: 1, 32>}, {pipeline_mode = #tpu.pipeline_mode<synchronous>, transform_indices = @transform_3, window_bounds = array<i64: 1, 32>}, {pipeline_mode = #tpu.pipeline_mode<synchronous>, transform_indices = @transform_4, window_bounds = array<i64: 1, 32>}, {pipeline_mode = #tpu.pipeline_mode<synchronous>, transform_indices = @transform_5, window_bounds = array<i64: 96, 32>}, {pipeline_mode = #tpu.pipeline_mode<synchronous>, transform_indices = @transform_6, window_bounds = array<i64: 1, 32>}, {pipeline_mode = #tpu.pipeline_mode<synchronous>, transform_indices = @transform_7, window_bounds = array<i64: 1, 32>}, {pipeline_mode = #tpu.pipeline_mode<synchronous>, transform_indices = @transform_8, window_bounds = array<i64: 1, 32>}, {pipeline_mode = #tpu.pipeline_mode<synchronous>, transform_indices = @transform_9, window_bounds = array<i64: 32, 1>}, {pipeline_mode = #tpu.pipeline_mode<synchronous>, transform_indices = @transform_10, window_bounds = array<i64: 1, 1>}, {pipeline_mode = #tpu.pipeline_mode<synchronous>, transform_indices = @transform_11, window_bounds = array<i64: 1, 32>}]} {
    %c0 = arith.constant 0 : index
    %c0_0 = arith.constant 0 : index
    %c0_1 = arith.constant 0 : index
    %0 = vector.load %arg1[%c0, %c0_0, %c0_1] : memref<2x16x32xf32, #tpu.memory_space<vmem>>, vector<1x16x32xf32>
    %1 = vector.shape_cast %0 : vector<1x16x32xf32> to vector<16x32xf32>
    %cst = arith.constant 0.000000e+00 : f32
    %2 = vector.broadcast %cst : f32 to vector<1x32xf32>
    %3 = vector.extract_strided_slice %1 {offsets = [0, 0], sizes = [15, 32], strides = [1, 1]} : vector<16x32xf32> to vector<15x32xf32>
    %4 = tpu.concatenate %2, %3 in 0 : vector<1x32xf32>, vector<15x32xf32> -> vector<16x32xf32>
    %5 = vector.extract_strided_slice %1 {offsets = [1, 0], sizes = [15, 32], strides = [1, 1]} : vector<16x32xf32> to vector<15x32xf32>
    %6 = tpu.concatenate %5, %2 in 0 : vector<15x32xf32>, vector<1x32xf32> -> vector<16x32xf32>
    %7 = tpu.concatenate %4, %1, %6 in 1 : vector<16x32xf32>, vector<16x32xf32>, vector<16x32xf32> -> vector<16x96xf32>
    %c1 = arith.constant 1 : index
    %c0_2 = arith.constant 0 : index
    %c0_3 = arith.constant 0 : index
    %8 = vector.load %arg1[%c1, %c0_2, %c0_3] : memref<2x16x32xf32, #tpu.memory_space<vmem>>, vector<1x16x32xf32>
    %9 = vector.shape_cast %8 : vector<1x16x32xf32> to vector<16x32xf32>
    %cst_4 = arith.constant 0.000000e+00 : f32
    %10 = vector.broadcast %cst_4 : f32 to vector<1x32xf32>
    %11 = vector.extract_strided_slice %9 {offsets = [0, 0], sizes = [15, 32], strides = [1, 1]} : vector<16x32xf32> to vector<15x32xf32>
    %12 = tpu.concatenate %10, %11 in 0 : vector<1x32xf32>, vector<15x32xf32> -> vector<16x32xf32>
    %13 = vector.extract_strided_slice %9 {offsets = [1, 0], sizes = [15, 32], strides = [1, 1]} : vector<16x32xf32> to vector<15x32xf32>
    %14 = tpu.concatenate %13, %10 in 0 : vector<15x32xf32>, vector<1x32xf32> -> vector<16x32xf32>
    %15 = tpu.concatenate %12, %9, %14 in 1 : vector<16x32xf32>, vector<16x32xf32>, vector<16x32xf32> -> vector<16x96xf32>
    %16 = tpu.concatenate %7, %15 in 0 : vector<16x96xf32>, vector<16x96xf32> -> vector<32x96xf32>
    %17 = arith.truncf %16 : vector<32x96xf32> to vector<32x96xbf16>
    %c0_5 = arith.constant 0 : index
    %c0_6 = arith.constant 0 : index
    %18 = vector.load %arg2[%c0_5, %c0_6] : memref<96x32xbf16, #tpu.memory_space<vmem>>, vector<96x32xbf16>
    %cst_7 = arith.constant dense<0.000000e+00> : vector<32x32xf32>
    %19 = tpu.matmul %17, %18, %cst_7 {dimension_numbers = #tpu.dot_dimension_numbers<[1], [0], [0], [1], [0, 0, 1, 1], [], []>} : vector<32x96xbf16>, vector<96x32xbf16>, vector<32x32xf32> -> vector<32x32xf32>
    %c0_8 = arith.constant 0 : index
    %c0_9 = arith.constant 0 : index
    %20 = vector.load %arg3[%c0_8, %c0_9] : memref<1x32xf32, #tpu.memory_space<vmem>>, vector<1x32xf32>
    %21 = vector.broadcast %20 : vector<1x32xf32> to vector<32x32xf32>
    %22 = arith.addf %19, %21 : vector<32x32xf32>
    %cst_10 = arith.constant 0.000000e+00 : f32
    %23 = vector.broadcast %cst_10 : f32 to vector<32x32xf32>
    %24 = arith.maximumf %22, %23 : vector<32x32xf32>
    %c0_11 = arith.constant 0 : index
    %c0_12 = arith.constant 0 : index
    %25 = vector.load %arg4[%c0_11, %c0_12] : memref<1x32xf32, #tpu.memory_space<vmem>>, vector<1x32xf32>
    %c0_13 = arith.constant 0 : index
    %c0_14 = arith.constant 0 : index
    %26 = vector.load %arg5[%c0_13, %c0_14] : memref<1x32xf32, #tpu.memory_space<vmem>>, vector<1x32xf32>
    %cst_15 = arith.constant dense<0.000000e+00> : vector<32xf32>
    %27 = vector.multi_reduction <add>, %24, %cst_15 [1] : vector<32x32xf32> to vector<32xf32>
    %28 = vector.shape_cast %27 : vector<32xf32> to vector<32x1xf32>
    %cst_16 = arith.constant 3.200000e+01 : f32
    %29 = vector.broadcast %cst_16 : f32 to vector<32x1xf32>
    %30 = arith.divf %28, %29 : vector<32x1xf32>
    %31 = arith.mulf %24, %24 : vector<32x32xf32>
    %cst_17 = arith.constant dense<0.000000e+00> : vector<32xf32>
    %32 = vector.multi_reduction <add>, %31, %cst_17 [1] : vector<32x32xf32> to vector<32xf32>
    %33 = vector.shape_cast %32 : vector<32xf32> to vector<32x1xf32>
    %cst_18 = arith.constant 3.200000e+01 : f32
    %34 = vector.broadcast %cst_18 : f32 to vector<32x1xf32>
    %35 = arith.divf %33, %34 : vector<32x1xf32>
    %36 = arith.mulf %30, %30 : vector<32x1xf32>
    %37 = arith.subf %35, %36 : vector<32x1xf32>
    %cst_19 = arith.constant 0.000000e+00 : f32
    %38 = vector.broadcast %cst_19 : f32 to vector<32x1xf32>
    %39 = arith.maximumf %37, %38 : vector<32x1xf32>
    %40 = vector.broadcast %30 : vector<32x1xf32> to vector<32x32xf32>
    %41 = arith.subf %24, %40 : vector<32x32xf32>
    %cst_20 = arith.constant 9.99999974E-6 : f32
    %42 = vector.broadcast %cst_20 : f32 to vector<32x1xf32>
    %43 = arith.addf %39, %42 : vector<32x1xf32>
    %44 = math.rsqrt %43 : vector<32x1xf32>
    %45 = vector.broadcast %44 : vector<32x1xf32> to vector<32x32xf32>
    %46 = arith.mulf %41, %45 : vector<32x32xf32>
    %47 = vector.broadcast %25 : vector<1x32xf32> to vector<32x32xf32>
    %48 = arith.mulf %46, %47 : vector<32x32xf32>
    %49 = vector.broadcast %26 : vector<1x32xf32> to vector<32x32xf32>
    %50 = arith.addf %48, %49 : vector<32x32xf32>
    %51 = vector.extract_strided_slice %50 {offsets = [0, 0], sizes = [16, 32], strides = [1, 1]} : vector<32x32xf32> to vector<16x32xf32>
    %cst_21 = arith.constant 0.000000e+00 : f32
    %52 = vector.broadcast %cst_21 : f32 to vector<1x32xf32>
    %53 = vector.extract_strided_slice %51 {offsets = [0, 0], sizes = [15, 32], strides = [1, 1]} : vector<16x32xf32> to vector<15x32xf32>
    %54 = tpu.concatenate %52, %53 in 0 : vector<1x32xf32>, vector<15x32xf32> -> vector<16x32xf32>
    %55 = vector.extract_strided_slice %51 {offsets = [1, 0], sizes = [15, 32], strides = [1, 1]} : vector<16x32xf32> to vector<15x32xf32>
    %56 = tpu.concatenate %55, %52 in 0 : vector<15x32xf32>, vector<1x32xf32> -> vector<16x32xf32>
    %57 = tpu.concatenate %54, %51, %56 in 1 : vector<16x32xf32>, vector<16x32xf32>, vector<16x32xf32> -> vector<16x96xf32>
    %58 = vector.extract_strided_slice %50 {offsets = [16, 0], sizes = [16, 32], strides = [1, 1]} : vector<32x32xf32> to vector<16x32xf32>
    %cst_22 = arith.constant 0.000000e+00 : f32
    %59 = vector.broadcast %cst_22 : f32 to vector<1x32xf32>
    %60 = vector.extract_strided_slice %58 {offsets = [0, 0], sizes = [15, 32], strides = [1, 1]} : vector<16x32xf32> to vector<15x32xf32>
    %61 = tpu.concatenate %59, %60 in 0 : vector<1x32xf32>, vector<15x32xf32> -> vector<16x32xf32>
    %62 = vector.extract_strided_slice %58 {offsets = [1, 0], sizes = [15, 32], strides = [1, 1]} : vector<16x32xf32> to vector<15x32xf32>
    %63 = tpu.concatenate %62, %59 in 0 : vector<15x32xf32>, vector<1x32xf32> -> vector<16x32xf32>
    %64 = tpu.concatenate %61, %58, %63 in 1 : vector<16x32xf32>, vector<16x32xf32>, vector<16x32xf32> -> vector<16x96xf32>
    %65 = tpu.concatenate %57, %64 in 0 : vector<16x96xf32>, vector<16x96xf32> -> vector<32x96xf32>
    %66 = arith.truncf %65 : vector<32x96xf32> to vector<32x96xbf16>
    %c0_23 = arith.constant 0 : index
    %c0_24 = arith.constant 0 : index
    %67 = vector.load %arg6[%c0_23, %c0_24] : memref<96x32xbf16, #tpu.memory_space<vmem>>, vector<96x32xbf16>
    %cst_25 = arith.constant dense<0.000000e+00> : vector<32x32xf32>
    %68 = tpu.matmul %66, %67, %cst_25 {dimension_numbers = #tpu.dot_dimension_numbers<[1], [0], [0], [1], [0, 0, 1, 1], [], []>} : vector<32x96xbf16>, vector<96x32xbf16>, vector<32x32xf32> -> vector<32x32xf32>
    %c0_26 = arith.constant 0 : index
    %c0_27 = arith.constant 0 : index
    %69 = vector.load %arg7[%c0_26, %c0_27] : memref<1x32xf32, #tpu.memory_space<vmem>>, vector<1x32xf32>
    %70 = vector.broadcast %69 : vector<1x32xf32> to vector<32x32xf32>
    %71 = arith.addf %68, %70 : vector<32x32xf32>
    %cst_28 = arith.constant 0.000000e+00 : f32
    %72 = vector.broadcast %cst_28 : f32 to vector<32x32xf32>
    %73 = arith.maximumf %71, %72 : vector<32x32xf32>
    %c0_29 = arith.constant 0 : index
    %c0_30 = arith.constant 0 : index
    %74 = vector.load %arg8[%c0_29, %c0_30] : memref<1x32xf32, #tpu.memory_space<vmem>>, vector<1x32xf32>
    %c0_31 = arith.constant 0 : index
    %c0_32 = arith.constant 0 : index
    %75 = vector.load %arg9[%c0_31, %c0_32] : memref<1x32xf32, #tpu.memory_space<vmem>>, vector<1x32xf32>
    %cst_33 = arith.constant dense<0.000000e+00> : vector<32xf32>
    %76 = vector.multi_reduction <add>, %73, %cst_33 [1] : vector<32x32xf32> to vector<32xf32>
    %77 = vector.shape_cast %76 : vector<32xf32> to vector<32x1xf32>
    %cst_34 = arith.constant 3.200000e+01 : f32
    %78 = vector.broadcast %cst_34 : f32 to vector<32x1xf32>
    %79 = arith.divf %77, %78 : vector<32x1xf32>
    %80 = arith.mulf %73, %73 : vector<32x32xf32>
    %cst_35 = arith.constant dense<0.000000e+00> : vector<32xf32>
    %81 = vector.multi_reduction <add>, %80, %cst_35 [1] : vector<32x32xf32> to vector<32xf32>
    %82 = vector.shape_cast %81 : vector<32xf32> to vector<32x1xf32>
    %cst_36 = arith.constant 3.200000e+01 : f32
    %83 = vector.broadcast %cst_36 : f32 to vector<32x1xf32>
    %84 = arith.divf %82, %83 : vector<32x1xf32>
    %85 = arith.mulf %79, %79 : vector<32x1xf32>
    %86 = arith.subf %84, %85 : vector<32x1xf32>
    %cst_37 = arith.constant 0.000000e+00 : f32
    %87 = vector.broadcast %cst_37 : f32 to vector<32x1xf32>
    %88 = arith.maximumf %86, %87 : vector<32x1xf32>
    %89 = vector.broadcast %79 : vector<32x1xf32> to vector<32x32xf32>
    %90 = arith.subf %73, %89 : vector<32x32xf32>
    %cst_38 = arith.constant 9.99999974E-6 : f32
    %91 = vector.broadcast %cst_38 : f32 to vector<32x1xf32>
    %92 = arith.addf %88, %91 : vector<32x1xf32>
    %93 = math.rsqrt %92 : vector<32x1xf32>
    %94 = vector.broadcast %93 : vector<32x1xf32> to vector<32x32xf32>
    %95 = arith.mulf %90, %94 : vector<32x32xf32>
    %96 = vector.broadcast %74 : vector<1x32xf32> to vector<32x32xf32>
    %97 = arith.mulf %95, %96 : vector<32x32xf32>
    %98 = vector.broadcast %75 : vector<1x32xf32> to vector<32x32xf32>
    %99 = arith.addf %97, %98 : vector<32x32xf32>
    %100 = tpu.transpose %99, [1, 0] : vector<32x32xf32> -> vector<32x32xf32>
    %c0_39 = arith.constant 0 : index
    %c0_40 = arith.constant 0 : index
    %101 = vector.load %arg10[%c0_39, %c0_40] : memref<32x1xf32, #tpu.memory_space<vmem>>, vector<32x1xf32>
    %102 = vector.broadcast %101 : vector<32x1xf32> to vector<32x32xf32>
    %103 = arith.mulf %100, %102 : vector<32x32xf32>
    %cst_41 = arith.constant dense<0.000000e+00> : vector<32xf32>
    %104 = vector.multi_reduction <add>, %103, %cst_41 [0] : vector<32x32xf32> to vector<32xf32>
    %105 = vector.shape_cast %104 : vector<32xf32> to vector<1x32xf32>
    %c0_42 = arith.constant 0 : index
    %c0_43 = arith.constant 0 : index
    %106 = vector.load %arg11[%c0_42, %c0_43] : memref<1x1xf32, #tpu.memory_space<vmem>>, vector<1x1xf32>
    %107 = vector.broadcast %106 : vector<1x1xf32> to vector<1x32xf32>
    %108 = arith.addf %105, %107 : vector<1x32xf32>
    %c0_44 = arith.constant 0 : index
    %c0_45 = arith.constant 0 : index
    %109 = vector.load %arg12[%c0_44, %c0_45] : memref<1x32xf32, #tpu.memory_space<vmem>>, vector<1x32xf32>
    tpu.vector_store %arg12[%c0_44, %c0_45], %108 {strides = array<i32>} : memref<1x32xf32, #tpu.memory_space<vmem>>, vector<1x32xf32>,
    return
  }
  func.func @transform_0(%arg0: i32) -> (i32, i32, i32) {
    %c0_i32 = arith.constant 0 : i32
    %c0_i32_0 = arith.constant 0 : i32
    %c0_i32_1 = arith.constant 0 : i32
    %c0_i32_2 = arith.constant 0 : i32
    return %c0_i32, %c0_i32_0, %c0_i32_1 : i32, i32, i32
  }
  func.func @transform_1(%arg0: i32) -> (i32, i32) {
    %c0_i32 = arith.constant 0 : i32
    %c0_i32_0 = arith.constant 0 : i32
    %c0_i32_1 = arith.constant 0 : i32
    return %c0_i32, %c0_i32_0 : i32, i32
  }
  func.func @transform_2(%arg0: i32) -> (i32, i32) {
    %c0_i32 = arith.constant 0 : i32
    %c0_i32_0 = arith.constant 0 : i32
    %c0_i32_1 = arith.constant 0 : i32
    return %c0_i32, %c0_i32_0 : i32, i32
  }
  func.func @transform_3(%arg0: i32) -> (i32, i32) {
    %c0_i32 = arith.constant 0 : i32
    %c0_i32_0 = arith.constant 0 : i32
    %c0_i32_1 = arith.constant 0 : i32
    return %c0_i32, %c0_i32_0 : i32, i32
  }
  func.func @transform_4(%arg0: i32) -> (i32, i32) {
    %c0_i32 = arith.constant 0 : i32
    %c0_i32_0 = arith.constant 0 : i32
    %c0_i32_1 = arith.constant 0 : i32
    return %c0_i32, %c0_i32_0 : i32, i32
  }
  func.func @transform_5(%arg0: i32) -> (i32, i32) {
    %c0_i32 = arith.constant 0 : i32
    %c0_i32_0 = arith.constant 0 : i32
    %c0_i32_1 = arith.constant 0 : i32
    return %c0_i32, %c0_i32_0 : i32, i32
  }
  func.func @transform_6(%arg0: i32) -> (i32, i32) {
    %c0_i32 = arith.constant 0 : i32
    %c0_i32_0 = arith.constant 0 : i32
    %c0_i32_1 = arith.constant 0 : i32
    return %c0_i32, %c0_i32_0 : i32, i32
  }
  func.func @transform_7(%arg0: i32) -> (i32, i32) {
    %c0_i32 = arith.constant 0 : i32
    %c0_i32_0 = arith.constant 0 : i32
    %c0_i32_1 = arith.constant 0 : i32
    return %c0_i32, %c0_i32_0 : i32, i32
  }
  func.func @transform_8(%arg0: i32) -> (i32, i32) {
    %c0_i32 = arith.constant 0 : i32
    %c0_i32_0 = arith.constant 0 : i32
    %c0_i32_1 = arith.constant 0 : i32
    return %c0_i32, %c0_i32_0 : i32, i32
  }
  func.func @transform_9(%arg0: i32) -> (i32, i32) {
    %c0_i32 = arith.constant 0 : i32
    %c0_i32_0 = arith.constant 0 : i32
    %c0_i32_1 = arith.constant 0 : i32
    return %c0_i32, %c0_i32_0 : i32, i32
  }
  func.func @transform_10(%arg0: i32) -> (i32, i32) {
    %c0_i32 = arith.constant 0 : i32
    %c0_i32_0 = arith.constant 0 : i32
    %c0_i32_1 = arith.constant 0 : i32
    return %c0_i32, %c0_i32_0 : i32, i32
  }
  func.func @transform_11(%arg0: i32) -> (i32, i32) {
    %c0_i32 = arith.constant 0 : i32
    %c0_i32_0 = arith.constant 0 : i32
    %c0_i32_1 = arith.constant 0 : i32
    return %c0_i32, %c0_i32_0 : i32, i32
  }
}

</mosaic_0001>

<bundles_post_ra>
// kernel: tpu_custom_call.1
= control target key start
LH: loop header
LB: loop body
LE: loop exit
PB: predicated region body
PF: predicated region fallthrough
CT: control target
= control target key end

     0   :  { %s1106_s0 = inlined_call_operand.vmem [shape: f32[2,16,32], index: 0, kind: input, shape index: {}]   ;;  %s1107_s1 = inlined_call_operand.vmem [shape: bf16[96,32], index: 1, kind: input, shape index: {}]   ;;  %s1108_s2 = inlined_call_operand.vmem [shape: f32[1,32], index: 2, kind: input, shape index: {}]   ;;  %s1109_s3 = inlined_call_operand.vmem [shape: f32[1,32], index: 3, kind: input, shape index: {}]   ;;  %s1110_s4 = inlined_call_operand.vmem [shape: f32[1,32], index: 4, kind: input, shape index: {}]   ;;  %s1111_s5 = inlined_call_operand.vmem [shape: bf16[96,32], index: 5, kind: input, shape index: {}]   ;;  %s1112_s6 = inlined_call_operand.vmem [shape: f32[1,32], index: 6, kind: input, shape index: {}]   ;;  %s1113_s7 = inlined_call_operand.vmem [shape: f32[1,32], index: 7, kind: input, shape index: {}]   ;;  %s1114_s8 = inlined_call_operand.vmem [shape: f32[1,32], index: 8, kind: input, shape index: {}]   ;;  %s1115_s9 = inlined_call_operand.vmem [shape: f32[32,1], index: 9, kind: input, shape index: {}]   ;;  %s1116_s10 = inlined_call_operand.<no memory space> [shape: f32[1,1], index: 10, kind: input, shape index: {}]   ;;  %s1117_s11 = inlined_call_operand.hbm [shape: f32[1,32], index: 11, kind: output, shape index: {}]  }
   0x1   :  { %v16_v0 = vstv %s1116_s10 }
   0x2   :  { %17 = vst [vmem:[#allocation2] sm:$0x1] %v16_v0 }
   0x3   :  { %v677_v1 = vld [vmem:[%s1106_s0 + $0x10] sm:$0xff]  ;;  %v678_v2 = vld [vmem:[%s1106_s0 + $0x18] sm:$0xff]  ;;  %vm46_vm0 = vcmask 1040384   ;;  %v42_v3 = vld [vmem:[%s1106_s0] sm:$0xff]  ;;  %vm53_vm1 = vcmask 1046528   ;;  %s846_s30 = smov 32  }
   0x4   :  { %v84_v4 = vrot.slane %v678_v2, 7  ;;  %v90_v5 = vrot.slane %v678_v2, 1  ;;  %v764_v6 = vpack.i.bf16 %v678_v2, %v677_v1  ;;  %v83_v7 = vrot.slane %v677_v1, 7  ;;  %v43_v8 = vld [vmem:[%s1106_s0 + $0x8] sm:$0xff]  ;;  %v797_v14 = vld [vmem:[%s1107_s1 + $0x20] sm:$0xff]   ;;  %v798_v20 = vld [vmem:[%s1107_s1 + $0x18] sm:$0xff]  }
   0x5   :  { %v796_v9 = vld [vmem:[%s1107_s1 + $0x28] sm:$0xff]   ;;  %v89_v10 = vrot.slane %v677_v1, 1  ;;  %v48_v11 = vrot.slane %v43_v8, 7  ;;  %v55_v12 = vrot.slane %v43_v8, 1  ;;  %v754_v13 = vpack.i.bf16 %v43_v8, %v42_v3  ;;  %s847_s13 = smov 64   ;;  %v799_v26 = vld [vmem:[%s1107_s1 + $0x10] sm:$0xff]  }
   0x6   :  { %765 = vrot.lane.b32.xlu1 %v764_v6, %s846_s30  ;;  %v47_v15 = vrot.slane %v42_v3, 7  ;;  %v54_v16 = vrot.slane %v42_v3, 1  ;;  %v93_v17 = vsel %vm53_vm1, %v90_v5, 0.0  ;;  %717 = vmatprep.subr.bf16.mxu0 %v796_v9  ;;  %v85_v21 = vsel %vm46_vm0, %v83_v7, %v84_v4  ;;  %v800_v27 = vld [vmem:[%s1107_s1 + $0x8] sm:$0xff]  }
   0x7   :  { %755 = vrot.lane.b32.xlu0 %v754_v13, %s846_s30  ;;  %v91_v18 = vsel %vm53_vm1, %v89_v10, %v90_v5  ;;  %v58_v19 = vsel %vm53_vm1, %v55_v12, 0.0  ;;  %718 = vmatpush3.bf16.msra.mxu0 %v796_v9 }
   0x8   :  { %v769_v22 = vpack.i.bf16 %v93_v17, %v91_v18  ;;  %v56_v23 = vsel %vm53_vm1, %v54_v16, %v55_v12  ;;  %719 = vmatprep.subr.bf16.mxu0 %v797_v14  ;;  %v49_v24 = vsel %vm46_vm0, %v47_v15, %v48_v11 }
   0x9   :  { %v759_v25 = vpack.i.bf16 %v58_v19, %v56_v23 }
   0xa   :  { %770 = vrot.lane.b32.xlu1 %v769_v22, %s847_s13 }
   0xb   :  { %760 = vrot.lane.b32.xlu0 %v759_v25, %s847_s13  ;;  %720 = vmatpush3.bf16.msra.mxu0 %v797_v14 }
   0xc   :  { %721 = vmatprep.subr.bf16.mxu0 %v798_v20 }
   0xf   :  { %722 = vmatpush3.bf16.msra.mxu0 %v798_v20 }
  0x10   :  { %723 = vmatprep.subr.bf16.mxu0 %v799_v26 }
  0x11   :  { %18 = vsyncpa [#allocation4], 0  ;;  %v801_v28 = vld [vmem:[%s1107_s1] sm:$0xff]   ;;  %v88_v33 = vsel %vm46_vm0, 0.0, %v83_v7  ;;  %vm72_vm2 = vcmask 261120   ;;  %vm75_vm3 = vcmask 523264  }
  0x12   :  { %v52_v37 = vsel %vm46_vm0, 0.0, %v47_v15  ;;  %vm168_vm4 = vcmask 785408   ;;  %v679_v53 = vld [vmem:[%s1108_s2] ss:$0 sm:$0xff]  ;;  %v802_v14 = vld [vmem:[%s1111_s5 + $0x28] sm:$0xff]   ;;  %v804_v16 = vld [vmem:[%s1111_s5 + $0x18] sm:$0xff]  }
  0x13   :  { %724 = vmatpush3.bf16.msra.mxu0 %v799_v26  ;;  %v803_v15 = vld [vmem:[%s1111_s5 + $0x20] sm:$0xff]   ;;  %733 = vmatprep.subr.bf16.mxu1 %v802_v14  ;;  %vm661_vm5 = vcmask 253952  }
  0x14   :  { %725 = vmatprep.subr.bf16.mxu0 %v800_v27  ;;  %734 = vmatpush3.bf16.msra.mxu1 %v802_v14 }
  0x15   :  { %735 = vmatprep.subr.bf16.mxu1 %v803_v15 }
  0x17   :  { %726 = vmatpush3.bf16.msra.mxu0 %v800_v27 }
  0x18   :  { %727 = vmatprep.subr.bf16.mxu0 %v801_v28  ;;  %736 = vmatpush3.bf16.msra.mxu1 %v803_v15 }
  0x19   :  { %737 = vmatprep.subr.bf16.mxu1 %v804_v16 }
  0x1b   :  { %728 = vmatpush3.bf16.msra.mxu0 %v801_v28 }
  0x1c   :  { %738 = vmatpush3.bf16.msra.mxu1 %v804_v16 }
  0x78   :  { %v766_v29 = vpop.permute.xlu1 %765 }
  0x79   :  { %v756_v30 = vpop.permute.xlu0 %755  ;;  %v768_v31 = vunpack.i.h.bf16 %v766_v29  ;;  %v767_v32 = vunpack.i.l.bf16 %v766_v29 }
  0x7a   :  { %v758_v34 = vunpack.i.h.bf16 %v756_v30  ;;  %v757_v35 = vunpack.i.l.bf16 %v756_v30 }
  0x7b   :  { %v107_v41 = vsel %vm72_vm2, %v88_v33, %v767_v32  ;;  %v108_v42 = vsel %vm72_vm2, %v85_v21, %v768_v31 }
  0x7c   :  { %v771_v36 = vpop.permute.xlu1 %770  ;;  %v73_v47 = vsel %vm72_vm2, %v52_v37, %v757_v35  ;;  %v74_v48 = vsel %vm72_vm2, %v49_v24, %v758_v34 }
  0x7d   :  { %v773_v38 = vunpack.i.h.bf16 %v771_v36  ;;  %v772_v39 = vunpack.i.l.bf16 %v771_v36  ;;  %v761_v40 = vpop.permute.xlu0 %760 }
  0x7e   :  { %v763_v43 = vunpack.i.h.bf16 %v761_v40  ;;  %v762_v44 = vunpack.i.l.bf16 %v761_v40 }
  0x7f   :  { %v109_v45 = vsel %vm75_vm3, %v107_v41, %v772_v39  ;;  %v110_v46 = vsel %vm75_vm3, %v108_v42, %v773_v38 }
  0x80   :  { %v112_v49 = vpack.c.bf16 %v110_v46, %v109_v45  ;;  %v76_v50 = vsel %vm75_vm3, %v73_v47, %v762_v44  ;;  %v77_v51 = vsel %vm75_vm3, %v74_v48, %v763_v43 }
  0x81   :  { %v111_v52 = vpack.c.bf16 %v77_v51, %v76_v50 }
  0x83   :  { %729 = vmatprep.mubr.msk.bf16.mxu0 %vm168_vm4, %v111_v52  ;;  %v688_v52 = vld [vmem:[%s1109_s3] ss:$0 sm:$0xff] }
  0x84   :  { %730 = vmatmul.mubr.msk.bf16.vlgmr.msra.gmra.mxu0 %vm168_vm4, %v112_v49 }
 0x144   :  { %v731_v54 = vpop.f32.mrf.mxu0 }
 0x145   :  { %v218_v55 = vadd.f32 %v731_v54, %v679_v53 }
 0x146   :  { %v209_v56 = vpop.f32.mrf.mxu0 }
 0x147   :  { %v968_v57 = vmax.f32 %v218_v55, 0.0  ;;  %v210_v58 = vadd.f32 %v679_v53, %v209_v56 }
 0x148   :  { %v732_v59 = vpop.f32.mrf.mxu0 }
 0x149   :  { %v970_v60 = vmax.f32 %v210_v58, 0.0  ;;  %v221_v61 = vadd.f32 %v732_v59, %v679_v53  ;;  %v236_v62 = vsel %vm72_vm2, %v968_v57, 0.0  ;;  %v249_v8 = vmul.f32 %v968_v57, %v968_v57  ;;  %v689_v59 = vld [vmem:[%s1110_s4] ss:$0 sm:$0xff] }
 0x14a   :  { %237 = vadd.xlane.f32.xlu0 %v236_v62  ;;  %v212_v63 = vpop.f32.mrf.mxu0 }
 0x14b   :  { %v213_v0 = vadd.f32 %v679_v53, %v212_v63  ;;  %v247_v1 = vmul.f32 %v970_v60, %v970_v60  ;;  %v976_v2 = vmax.f32 %v221_v61, 0.0  ;;  %v230_v5 = vsel %vm72_vm2, %v970_v60, 0.0  ;;  %v805_v53 = vld [vmem:[%s1111_s5 + $0x10] sm:$0xff]  }
 0x14c   :  { %v257_v10 = vsel %vm72_vm2, %v249_v8, 0.0  ;;  %739 = vmatprep.subr.bf16.mxu1 %v805_v53 }
 0x14d   :  { %v978_v3 = vmax.f32 %v213_v0, 0.0  ;;  %v251_v4 = vsel %vm72_vm2, %v247_v1, 0.0  ;;  %v239_v7 = vsel %vm72_vm2, %v976_v2, 0.0  ;;  %v250_v12 = vmul.f32 %v976_v2, %v976_v2  ;;  %740 = vmatpush3.bf16.msra.mxu1 %v805_v53  ;;  %v690_v53 = vld [vmem:[%s1112_s6] ss:$0 sm:$0xff] }
 0x14e   :  { %252 = vadd.xlane.f32.xlu1 %v251_v4  ;;  %231 = vadd.xlane.f32.xlu0 %v230_v5 }
 0x14f   :  { %v233_v6 = vsel %vm72_vm2, %v978_v3, 0.0  ;;  %v248_v9 = vmul.f32 %v978_v3, %v978_v3  ;;  %v260_v13 = vsel %vm72_vm2, %v250_v12, 0.0 }
 0x151   :  { %v254_v11 = vsel %vm72_vm2, %v248_v9, 0.0 }
 0x152   :  { %234 = vadd.xlane.f32.xlu1 %v233_v6  ;;  %240 = vadd.xlane.f32.xlu0 %v239_v7 }
 0x156   :  { %258 = vadd.xlane.f32.xlu1 %v257_v10  ;;  %255 = vadd.xlane.f32.xlu0 %v254_v11 }
 0x15a   :  { %261 = vadd.xlane.f32.xlu0 %v260_v13 }
 0x1d3   :  { %v238_v17 = vpop.xlane.xlu0 %237 }
 0x1d4   :  { %v245_v23 = vmul.f32 0.03125, %v238_v17 }
 0x1d6   :  { %v269_v29 = vmul.f32 %v245_v23, %v245_v23  ;;  %v281_v54 = vsub.f32 %v968_v57, %v245_v23 }
 0x1d7   :  { %v253_v18 = vpop.xlane.xlu1 %252  ;;  %v232_v19 = vpop.xlane.xlu0 %231 }
 0x1d8   :  { %v243_v20 = vmul.f32 0.03125, %v232_v19  ;;  %v263_v21 = vmul.f32 0.03125, %v253_v18 }
 0x1da   :  { %v267_v22 = vmul.f32 %v243_v20, %v243_v20  ;;  %v279_v49 = vsub.f32 %v970_v60, %v243_v20  ;;  %v806_v60 = vld [vmem:[%s1111_s5 + $0x8] sm:$0xff]  }
 0x1db   :  { %v235_v24 = vpop.xlane.xlu1 %234  ;;  %v241_v25 = vpop.xlane.xlu0 %240  ;;  %741 = vmatprep.subr.bf16.mxu1 %v806_v60 }
 0x1dc   :  { %v271_v26 = vsub.f32 %v263_v21, %v267_v22  ;;  %v244_v27 = vmul.f32 0.03125, %v235_v24  ;;  %v246_v30 = vmul.f32 0.03125, %v241_v25  ;;  %742 = vmatpush3.bf16.msra.mxu1 %v806_v60 }
 0x1de   :  { %v275_v28 = vmax.f32 %v271_v26, 0.0  ;;  %v268_v34 = vmul.f32 %v244_v27, %v244_v27  ;;  %v270_v40 = vmul.f32 %v246_v30, %v246_v30  ;;  %v280_v58 = vsub.f32 %v978_v3, %v244_v27  ;;  %v807_v3 = vld [vmem:[%s1111_s5] sm:$0xff]  }
 0x1df   :  { %v259_v31 = vpop.xlane.xlu1 %258  ;;  %v256_v32 = vpop.xlane.xlu0 %255  ;;  %v282_v0 = vsub.f32 %v976_v2, %v246_v30  ;;  %743 = vmatprep.subr.bf16.mxu1 %v807_v3 }
 0x1e0   :  { %v283_v33 = vadd.f32 1e-05, %v275_v28  ;;  %v265_v35 = vmul.f32 0.03125, %v259_v31  ;;  %v264_v36 = vmul.f32 0.03125, %v256_v32  ;;  %744 = vmatpush3.bf16.msra.mxu1 %v807_v3 }
 0x1e2   :  { %808 = vrsqrt.f32 %v283_v33  ;;  %v273_v37 = vsub.f32 %v265_v35, %v269_v29  ;;  %v272_v38 = vsub.f32 %v264_v36, %v268_v34 }
 0x1e3   :  { %v262_v39 = vpop.xlane.xlu0 %261 }
 0x1e4   :  { %v277_v41 = vmax.f32 %v273_v37, 0.0  ;;  %v276_v42 = vmax.f32 %v272_v38, 0.0  ;;  %v266_v43 = vmul.f32 0.03125, %v262_v39 }
 0x1e6   :  { %v285_v44 = vadd.f32 1e-05, %v277_v41  ;;  %v284_v45 = vadd.f32 1e-05, %v276_v42  ;;  %v274_v46 = vsub.f32 %v266_v43, %v270_v40 }
 0x1e8   :  { %810 = vrsqrt.f32 %v285_v44  ;;  %v278_v47 = vmax.f32 %v274_v46, 0.0 }
 0x1e9   :  { %812 = vrsqrt.f32 %v284_v45 }
 0x1ea   :  { %v286_v48 = vadd.f32 1e-05, %v278_v47 }
 0x1ec   :  { %814 = vrsqrt.f32 %v286_v48 }
 0x1ef   :  { %v809_v50 = vpop.eup %808 }
 0x1f0   :  { %v291_v51 = vmul.f32 %v809_v50, %v279_v49 }
 0x1f2   :  { %v301_v55 = vmul.f32 %v688_v52, %v291_v51 }
 0x1f4   :  { %v311_v57 = vadd.f32 %v689_v59, %v301_v55 }
 0x1f5   :  { %v811_v56 = vpop.eup %810 }
 0x1f6   :  { %v813_v61 = vpop.eup %812  ;;  %v293_v62 = vmul.f32 %v811_v56, %v281_v54  ;;  %v323_v9 = vrot.slane %v311_v57, 1  ;;  %v317_v13 = vrot.slane %v311_v57, 7 }
 0x1f7   :  { %v292_v63 = vmul.f32 %v813_v61, %v280_v58 }
 0x1f8   :  { %v303_v1 = vmul.f32 %v688_v52, %v293_v62  ;;  %v322_v35 = vsel %vm46_vm0, 0.0, %v317_v13 }
 0x1f9   :  { %v815_v4 = vpop.eup %814  ;;  %v302_v5 = vmul.f32 %v688_v52, %v292_v63 }
 0x1fa   :  { %v294_v6 = vmul.f32 %v815_v4, %v282_v0  ;;  %v313_v7 = vadd.f32 %v689_v59, %v303_v1 }
 0x1fb   :  { %v312_v8 = vadd.f32 %v689_v59, %v302_v5 }
 0x1fc   :  { %v304_v10 = vmul.f32 %v688_v52, %v294_v6  ;;  %v353_v15 = vrot.slane %v313_v7, 1  ;;  %v347_v18 = vrot.slane %v313_v7, 7  ;;  %v848_v52 = vmov 0  }
 0x1fd   :  { %v774_v11 = vpack.i.bf16 %v312_v8, %v311_v57  ;;  %v324_v12 = vrot.slane %v312_v8, 1  ;;  %v318_v2 = vrot.slane %v312_v8, 7  ;;  %794 = vset.pattern.permute.xlu1 %v848_v52  ;;  %795 = vset.pattern.permute.xlu0 %v848_v52 }
 0x1fe   :  { %v314_v14 = vadd.f32 %v689_v59, %v304_v10  ;;  %v352_v44 = vsel %vm46_vm0, 0.0, %v347_v18 }
 0x1ff   :  { %775 = vrot.lane.b32.xlu1 %v774_v11, %s846_s30  ;;  %v325_v16 = vsel %vm53_vm1, %v323_v9, %v324_v12  ;;  %v327_v17 = vsel %vm53_vm1, %v324_v12, 0.0  ;;  %v319_v19 = vsel %vm46_vm0, %v317_v13, %v318_v2 }
 0x200   :  { %v779_v20 = vpack.i.bf16 %v327_v17, %v325_v16  ;;  %v784_v21 = vpack.i.bf16 %v314_v14, %v313_v7  ;;  %v354_v22 = vrot.slane %v314_v14, 1  ;;  %v348_v23 = vrot.slane %v314_v14, 7  ;;  %v609_v14 = vld [vmem:[%s1115_s9] sm:$0xff]  ;;  %v612_v16 = vld [vmem:[%s1115_s9 + $0x18] sm:$0xff] }
 0x201   :  { %v650_v17 = vld [vmem:[#allocation2] sm:$0x1] }
 0x202   :  { %780 = vrot.lane.b32.xlu0 %v779_v20, %s847_s13  ;;  %v355_v24 = vsel %vm53_vm1, %v353_v15, %v354_v22  ;;  %v357_v25 = vsel %vm53_vm1, %v354_v22, 0.0  ;;  %v349_v26 = vsel %vm46_vm0, %v347_v18, %v348_v23  ;;  %v611_v15 = vld [vmem:[%s1115_s9 + $0x10] sm:$0xff]  ;;  %v610_v18 = vld [vmem:[%s1115_s9 + $0x8] sm:$0xff] }
 0x203   :  { %785 = vrot.lane.b32.xlu1 %v784_v21, %s846_s30  ;;  %v789_v27 = vpack.i.bf16 %v357_v25, %v355_v24 }
 0x207   :  { %790 = vrot.lane.b32.xlu1 %v789_v27, %s847_s13 }
 0x271   :  { %v776_v28 = vpop.permute.xlu1 %775 }
 0x272   :  { %v778_v29 = vunpack.i.h.bf16 %v776_v28  ;;  %v777_v30 = vunpack.i.l.bf16 %v776_v28 }
 0x274   :  { %v781_v31 = vpop.permute.xlu0 %780  ;;  %v341_v36 = vsel %vm72_vm2, %v322_v35, %v777_v30  ;;  %v342_v37 = vsel %vm72_vm2, %v319_v19, %v778_v29 }
 0x275   :  { %v783_v32 = vunpack.i.h.bf16 %v781_v31  ;;  %v782_v33 = vunpack.i.l.bf16 %v781_v31  ;;  %v786_v34 = vpop.permute.xlu1 %785 }
 0x276   :  { %v788_v38 = vunpack.i.h.bf16 %v786_v34  ;;  %v787_v39 = vunpack.i.l.bf16 %v786_v34 }
 0x277   :  { %v343_v40 = vsel %vm75_vm3, %v341_v36, %v782_v33  ;;  %v344_v41 = vsel %vm75_vm3, %v342_v37, %v783_v32 }
 0x278   :  { %v375_v42 = vpack.c.bf16 %v344_v41, %v343_v40  ;;  %v371_v47 = vsel %vm72_vm2, %v352_v44, %v787_v39  ;;  %v372_v48 = vsel %vm72_vm2, %v349_v26, %v788_v38 }
 0x279   :  { %v791_v43 = vpop.permute.xlu1 %790 }
 0x27a   :  { %v793_v45 = vunpack.i.h.bf16 %v791_v43  ;;  %v792_v46 = vunpack.i.l.bf16 %v791_v43  ;;  %745 = vmatprep.mubr.msk.bf16.mxu1 %vm168_vm4, %v375_v42 }
 0x27c   :  { %v373_v49 = vsel %vm75_vm3, %v371_v47, %v792_v46  ;;  %v374_v50 = vsel %vm75_vm3, %v372_v48, %v793_v45 }
 0x27d   :  { %v376_v51 = vpack.c.bf16 %v374_v50, %v373_v49 }
 0x27f   :  { %746 = vmatmul.mubr.msk.bf16.vlgmr.msra.gmra.mxu1 %vm168_vm4, %v376_v51 }
 0x33f   :  { %v747_v54 = vpop.f32.mrf.mxu1 }
 0x340   :  { %v481_v55 = vadd.f32 %v747_v54, %v690_v53 }
 0x341   :  { %v472_v56 = vpop.f32.mrf.mxu1 }
 0x342   :  { %v1049_v58 = vmax.f32 %v481_v55, 0.0  ;;  %v473_v59 = vadd.f32 %v690_v53, %v472_v56 }
 0x343   :  { %v748_v60 = vpop.f32.mrf.mxu1 }
 0x344   :  { %v1051_v61 = vmax.f32 %v473_v59, 0.0  ;;  %v499_v62 = vsel %vm72_vm2, %v1049_v58, 0.0  ;;  %v484_v57 = vadd.f32 %v748_v60, %v690_v53  ;;  %v511_v10 = vmul.f32 %v1049_v58, %v1049_v58  ;;  %v700_v59 = vld [vmem:[%s1114_s8] ss:$0 sm:$0xff] }
 0x345   :  { %500 = vadd.xlane.f32.xlu0 %v499_v62  ;;  %v475_v63 = vpop.f32.mrf.mxu1 }
 0x346   :  { %v476_v0 = vadd.f32 %v690_v53, %v475_v63  ;;  %v493_v4 = vsel %vm72_vm2, %v1051_v61, 0.0  ;;  %v509_v5 = vmul.f32 %v1051_v61, %v1051_v61  ;;  %v1065_v7 = vmax.f32 %v484_v57, 0.0  ;;  %v699_v53 = vld [vmem:[%s1113_s7] ss:$0 sm:$0xff]  ;;  %s849_s7 = smov [#allocation3]  }
 0x347   :  { %v519_v13 = vsel %vm72_vm2, %v511_v10, 0.0  ;;  %s669_s8 = sshll.u32 %s849_s7, 4  ;;  %s670_s8 = int_to_ptr.vmem [resolvable:$true] %s669_s8 }
 0x348   :  { %v1055_v1 = vmax.f32 %v476_v0, 0.0  ;;  %v513_v8 = vsel %vm72_vm2, %v509_v5, 0.0  ;;  %v502_v11 = vsel %vm72_vm2, %v1065_v7, 0.0  ;;  %v512_v12 = vmul.f32 %v1065_v7, %v1065_v7  ;;  %s824_s22 = scalar_lea.vmem %s670_s8, 16  ;;  %s828_s23 = scalar_lea.vmem %s670_s8, 32 }
 0x349   :  { %494 = vadd.xlane.f32.xlu0 %v493_v4  ;;  %p825_p0 = scmp.ne.s32.totalorder %s670_s8, %s824_s22  ;;  %p829_p1 = scmp.lt.s32.totalorder %s670_s8, %s670_s8 }
 0x34a   :  { %v496_v3 = vsel %vm72_vm2, %v1055_v1, 0.0  ;;  %v510_v6 = vmul.f32 %v1055_v1, %v1055_v1  ;;  %v522_v2 = vsel %vm72_vm2, %v512_v12, 0.0  ;;  %p830_p2 = scmp.lt.s32.totalorder %s828_s23, %s824_s22 }
 0x34b   :  { %497 = vadd.xlane.f32.xlu1 %v496_v3 }
 0x34c   :  { %v516_v9 = vsel %vm72_vm2, %v510_v6, 0.0  ;;  %p831_p3 = por %p830_p2, %p829_p1 }
 0x34d   :  { %514 = vadd.xlane.f32.xlu0 %v513_v8 }
 0x34e   :  { %p832_p4 = pnand %p831_p3, %p825_p0 }
 0x34f   :  { %517 = vadd.xlane.f32.xlu1 %v516_v9 }
 0x351   :  { %503 = vadd.xlane.f32.xlu0 %v502_v11 }
 0x353   :  { %520 = vadd.xlane.f32.xlu1 %v519_v13 }
 0x355   :  { %523 = vadd.xlane.f32.xlu0 %v522_v2 }
 0x364   :  { %615 = vperm.xlu1 %794, %v609_v14  }
 0x368   :  { %625 = vperm.xlu1 %794, %v611_v15  }
 0x36b   :  { %620 = vperm.xlu0 %795, %v610_v18  }
 0x36c   :  { %630 = vperm.xlu1 %794, %v612_v16  }
 0x370   :  { %653 = vperm.xlu1 %794, %v650_v17  }
 0x3ce   :  { %v501_v19 = vpop.xlane.xlu0 %500 }
 0x3cf   :  { %v507_v31 = vmul.f32 0.03125, %v501_v19 }
 0x3d1   :  { %v531_v39 = vmul.f32 %v507_v31, %v507_v31  ;;  %v543_v57 = vsub.f32 %v1049_v58, %v507_v31 }
 0x3d2   :  { %v495_v20 = vpop.xlane.xlu0 %494 }
 0x3d3   :  { %v505_v21 = vmul.f32 0.03125, %v495_v20 }
 0x3d4   :  { %v498_v22 = vpop.xlane.xlu1 %497 }
 0x3d5   :  { %v506_v23 = vmul.f32 0.03125, %v498_v22  ;;  %v529_v25 = vmul.f32 %v505_v21, %v505_v21  ;;  %v541_v51 = vsub.f32 %v1051_v61, %v505_v21 }
 0x3d6   :  { %v515_v24 = vpop.xlane.xlu0 %514 }
 0x3d7   :  { %v525_v26 = vmul.f32 0.03125, %v515_v24  ;;  %v530_v28 = vmul.f32 %v506_v23, %v506_v23  ;;  %v542_v54 = vsub.f32 %v1055_v1, %v506_v23 }
 0x3d8   :  { %v518_v27 = vpop.xlane.xlu1 %517 }
 0x3d9   :  { %v533_v29 = vsub.f32 %v525_v26, %v529_v25  ;;  %v526_v30 = vmul.f32 0.03125, %v518_v27 }
 0x3da   :  { %v504_v32 = vpop.xlane.xlu0 %503 }
 0x3db   :  { %v537_v33 = vmax.f32 %v533_v29, 0.0  ;;  %v534_v34 = vsub.f32 %v526_v30, %v530_v28  ;;  %v508_v35 = vmul.f32 0.03125, %v504_v32  ;;  %v656_v28 = vlaneseq }
 0x3dc   :  { %v521_v36 = vpop.xlane.xlu1 %520 }
 0x3dd   :  { %v545_v37 = vadd.f32 1e-05, %v537_v33  ;;  %v538_v38 = vmax.f32 %v534_v34, 0.0  ;;  %v527_v40 = vmul.f32 0.03125, %v521_v36  ;;  %v532_v43 = vmul.f32 %v508_v35, %v508_v35 }
 0x3de   :  { %v524_v41 = vpop.xlane.xlu0 %523  ;;  %v544_v4 = vsub.f32 %v1065_v7, %v508_v35  ;;  %v657_v31 = vshrl.u32 %v656_v28, 7 }
 0x3df   :  { %816 = vrsqrt.f32 %v545_v37  ;;  %v546_v42 = vadd.f32 1e-05, %v538_v38  ;;  %v528_v44 = vmul.f32 0.03125, %v524_v41  ;;  %v535_v45 = vsub.f32 %v527_v40, %v531_v39 }
 0x3e0   :  { %v616_v12 = vpop.permute.xlu1 %615  ;;  %v658_v34 = vsub.s32 0, %v657_v31 }
 0x3e1   :  { %818 = vrsqrt.f32 %v546_v42  ;;  %v536_v46 = vsub.f32 %v528_v44, %v532_v43  ;;  %v539_v47 = vmax.f32 %v535_v45, 0.0 }
 0x3e3   :  { %v540_v48 = vmax.f32 %v536_v46, 0.0  ;;  %v547_v49 = vadd.f32 1e-05, %v539_v47 }
 0x3e4   :  { %v626_v13 = vpop.permute.xlu1 %625 }
 0x3e5   :  { %v548_v50 = vadd.f32 1e-05, %v540_v48  ;;  %820 = vrsqrt.f32 %v547_v49 }
 0x3e6   :  { %v621_v15 = vpop.permute.xlu0 %620 }
 0x3e7   :  { %822 = vrsqrt.f32 %v548_v50 }
 0x3e8   :  { %v631_v2 = vpop.permute.xlu1 %630 }
 0x3ec   :  { %v817_v52 = vpop.eup %816  ;;  %v654_v14 = vpop.permute.xlu1 %653 }
 0x3ed   :  { %v553_v55 = vmul.f32 %v817_v52, %v541_v51  ;;  %v659_v37 = vrot.slane %v654_v14, %v658_v34 }
 0x3ee   :  { %v819_v56 = vpop.eup %818 }
 0x3ef   :  { %v563_v60 = vmul.f32 %v699_v53, %v553_v55  ;;  %v554_v62 = vmul.f32 %v819_v56, %v542_v54 }
 0x3f1   :  { %v573_v63 = vadd.f32 %v700_v59, %v563_v60  ;;  %v564_v0 = vmul.f32 %v699_v53, %v554_v62 }
 0x3f2   :  { %v821_v61 = vpop.eup %820 }
 0x3f3   :  { %577 = vxpose.xlu1.b32.start [1/4] (short) (narrow) %v573_v63, 32  ;;  %v555_v3 = vmul.f32 %v821_v61, %v543_v57  ;;  %v574_v6 = vadd.f32 %v700_v59, %v564_v0 }
 0x3f4   :  { %v823_v5 = vpop.eup %822 }
 0x3f5   :  { %v556_v1 = vmul.f32 %v823_v5, %v544_v4  ;;  %v565_v8 = vmul.f32 %v699_v53, %v555_v3 }
 0x3f7   :  { %578 = vxpose.xlu1.b32.cont [2/4] (short) (narrow) %v574_v6, 32  ;;  %v575_v9 = vadd.f32 %v700_v59, %v565_v8  ;;  %v566_v10 = vmul.f32 %v699_v53, %v556_v1 }
 0x3f9   :  { %v576_v11 = vadd.f32 %v700_v59, %v566_v10 }
 0x3fb   :  { %579 = vxpose.xlu1.b32.cont [3/4] (short) (narrow) %v575_v9, 32 }
 0x3ff   :  { %580 = vxpose.xlu1.b32.end [4/4] (short) (narrow) %v576_v11, 32 }
 0x46f   :  { %v593_v58 = vpop.trf.xlu1 }
 0x470   :  { %v633_v17 = vmul.f32 %v616_v12, %v593_v58 }
 0x472   :  { %v637_v21 = vsel %vm72_vm2, %v633_v17, 0.0 }
 0x473   :  { %v594_v16 = vpop.trf.xlu1 }
 0x474   :  { %v634_v7 = vmul.f32 %v621_v15, %v594_v16 }
 0x476   :  { %v638_v19 = vsel %vm72_vm2, %v634_v7, 0.0 }
 0x477   :  { %v595_v18 = vpop.trf.xlu1  ;;  %v639_v23 = vadd.f32 %v638_v19, %v637_v21 }
 0x478   :  { %v635_v20 = vmul.f32 %v626_v13, %v595_v18 }
 0x47a   :  { %v640_v22 = vsel %vm72_vm2, %v635_v20, 0.0 }
 0x47b   :  { %v596_v24 = vpop.trf.xlu1  ;;  %v641_v26 = vadd.f32 %v640_v22, %v639_v23 }
 0x47c   :  { %v636_v25 = vmul.f32 %v631_v2, %v596_v24 }
 0x47e   :  { %v642_v27 = vsel %vm72_vm2, %v636_v25, 0.0 }
 0x47f   :  { %v643_v29 = vadd.f32 %v642_v27, %v641_v26 }
 0x481   :  { %v644_v30 = vrot.slane %v643_v29, 4 }
 0x483   :  { %v645_v32 = vadd.f32 %v644_v30, %v643_v29 }
 0x485   :  { %v646_v33 = vrot.slane %v645_v32, 2 }
 0x487   :  { %v647_v35 = vadd.f32 %v646_v33, %v645_v32 }
 0x489   :  { %v648_v36 = vrot.slane %v647_v35, 1 }
 0x48b   :  { %v649_v38 = vadd.f32 %v648_v36, %v647_v35 }
 0x48d   :  { %v660_v39 = vadd.f32 %v659_v37, %v649_v38 }
 0x48f   :  { %662 = vst.msk [vmem:[#allocation3] sm:$0x1] %vm661_vm5, %v660_v39 }
 0x490   :  { %835 = shalt.err (!%p832_p4)
}
 0x491   :  { %672 = dma.vmem_to_hbm [thread:$0]  %s670_s8, 16, %s1117_s11, [#allocation4]  }
 0x492   :  { %844 = dma.done.wait [#allocation4], 16  }
 0x493   :  { %845 = vsyncadd [#allocation4], 4294967280 }
 0x494   :  { %676 = vsyncpa [#allocation4], 1 }

</bundles_post_ra>
